<compile_context>
chip_gen: v7x
topology: tpu7x:2x2x1
jax: 0.10.0
libtpu: 0.0.40
codegen_flags: <defaults>
</compile_context>

<pallas_src>
import functools

import numpy as np
import jax
import jax.numpy as jnp
from jax import lax
from jax.experimental import pallas as pl
from jax.experimental.pallas import tpu as pltpu


_VMEM_LIMIT_BYTES = 48 << 20    # explicit scoped-VMEM limit; < 64 MiB physical on v7x
_TARGET_TILE_BYTES = 4 << 20    # ~4 MiB x-tile: amortizes per-step overhead on all gens
_FUSED_VMEM_BUDGET = 40 << 20   # conservative bound for the fused path's VMEM footprint


# ---------------------------------------------------------------------------
# Fused kernel: stats + finalize + apply for one channel tile (primary path)
# ---------------------------------------------------------------------------

def _fused_cbn_kernel(x_ref, gain_ref, bias_ref, o_ref, *, eps, inv_n):
    """Per-channel-tile conditional batchnorm.

    x_ref:    (B, ct, HW)  lane-dense input slab (full batch, full spatial)
    gain_ref: (B, ct, 1)   per-sample/per-channel gain  (= 1 + embed0(y))
    bias_ref: (B, ct, 1)   per-sample/per-channel bias  (=     embed1(y))
    o_ref:    (B, ct, HW)  output
    """
    x = x_ref[...].astype(jnp.float32)

    # Per-channel mean over batch (major axis) and spatial (lane axis).
    s = jnp.sum(x, axis=2, keepdims=True)                 # (B, ct, 1)   XLU lane reduce
    mean = jnp.sum(s, axis=0, keepdims=True) * inv_n      # (1, ct, 1)

    # Shifted (two-pass) variance: avoids E[x^2]-mean^2 cancellation.
    xc = x - mean                                          # (B, ct, HW)
    sq = jnp.sum(xc * xc, axis=2, keepdims=True)           # (B, ct, 1)
    var = jnp.sum(sq, axis=0, keepdims=True) * inv_n       # (1, ct, 1)  biased (BN train)

    inv_std = lax.rsqrt(var + eps)                         # (1, ct, 1)  EUP
    scale = gain_ref[...].astype(jnp.float32) * inv_std    # (B, ct, 1)
    shift = bias_ref[...].astype(jnp.float32)              # (B, ct, 1)

    o_ref[...] = (xc * scale + shift).astype(o_ref.dtype)


def _channel_tile(B, C, HW, itemsize):
    """Largest multiple-of-8 divisor of C whose (B, ct, HW) slab is ~<= 4 MiB.
    If C is not a multiple of 8, only the full-C block satisfies layout rules."""
    if C % 8 != 0:
        return C
    per_channel = max(B * HW * itemsize, 1)
    max_ct = (_TARGET_TILE_BYTES // per_channel) // 8 * 8
    max_ct = max(8, min(int(max_ct), C))
    for cand in range(max_ct, 7, -8):
        if C % cand == 0:
            return cand
    return 8


def _fused_vmem_estimate(B, ct, HW, in_itemsize, out_itemsize):
    # 2x double-buffered input + 2x double-buffered output + ~3 f32 intermediates.
    elems = B * ct * HW
    return elems * (2 * in_itemsize + 2 * out_itemsize + 3 * 4)


def _fused_path(x3, gain, bias, ct, eps):
    B, C, HW = x3.shape
    grid = (C // ct,)
    kernel = functools.partial(
        _fused_cbn_kernel, eps=float(eps), inv_n=1.0 / float(B * HW))
    gain3 = gain.astype(jnp.float32).reshape(B, C, 1)
    bias3 = bias.astype(jnp.float32).reshape(B, C, 1)
    return pl.pallas_call(
        kernel,
        out_shape=jax.ShapeDtypeStruct((B, C, HW), x3.dtype),
        grid_spec=pltpu.PrefetchScalarGridSpec(
            num_scalar_prefetch=0,
            grid=grid,
            in_specs=[pl.BlockSpec((B, ct, HW), lambda ci: (0, ci, 0)),
                      pl.BlockSpec((B, ct, 1), lambda ci: (0, ci, 0)),
                      pl.BlockSpec((B, ct, 1), lambda ci: (0, ci, 0))],
            out_specs=pl.BlockSpec((B, ct, HW), lambda ci: (0, ci, 0)),
        ),
        compiler_params=pltpu.CompilerParams(
            dimension_semantics=("parallel",),
            vmem_limit_bytes=_VMEM_LIMIT_BYTES),
    )(x3, gain3, bias3)


# ---------------------------------------------------------------------------
# Two-pass fallback (only when a single (B, ct>=8, HW) slab cannot fit VMEM)
# ---------------------------------------------------------------------------

def _stats_kernel(x_ref, sum_ref, sq_ref):
    @pl.when(pl.program_id(0) == 0)
    def _():
        sum_ref[...] = jnp.zeros_like(sum_ref)
        sq_ref[...] = jnp.zeros_like(sq_ref)

    x = x_ref[...].astype(jnp.float32)
    sum_ref[...] += jnp.sum(jnp.sum(x, axis=2), axis=0, keepdims=True)      # (1, C)
    sq_ref[...] += jnp.sum(jnp.sum(x * x, axis=2), axis=0, keepdims=True)   # (1, C)


def _apply_kernel(x_ref, scale_ref, shift_ref, o_ref):
    x = x_ref[...].astype(jnp.float32)
    o_ref[...] = (x * scale_ref[...] + shift_ref[...]).astype(o_ref.dtype)


def _batch_tile(batch, per_sample_bytes):
    bt = max(1, min(batch, _TARGET_TILE_BYTES // max(per_sample_bytes, 1)))
    while batch % bt:   # divisor of B so padded blocks never pollute the statistics
        bt -= 1
    return bt


def _two_pass_path(x3, gain, bias, eps):
    B, C, HW = x3.shape
    bt = _batch_tile(B, C * HW * x3.dtype.itemsize)
    # TODO(synk): if even a single-sample (1, C, HW) tile exceeds VMEM, spatial (HW)
    # tiling of the stats/apply passes would be required; not implemented here.
    grid = (B // bt,)

    sum_x, sum_sq = pl.pallas_call(
        _stats_kernel,
        out_shape=(jax.ShapeDtypeStruct((1, C), jnp.float32),
                   jax.ShapeDtypeStruct((1, C), jnp.float32)),
        grid_spec=pltpu.PrefetchScalarGridSpec(
            num_scalar_prefetch=0,
            grid=grid,
            in_specs=[pl.BlockSpec((bt, C, HW), lambda i: (i, 0, 0))],
            out_specs=[pl.BlockSpec((1, C), lambda i: (0, 0)),
                       pl.BlockSpec((1, C), lambda i: (0, 0))],
        ),
        compiler_params=pltpu.CompilerParams(
            dimension_semantics=("arbitrary",),
            vmem_limit_bytes=_VMEM_LIMIT_BYTES),
    )(x3)

    count = jnp.float32(B * HW)
    mean = sum_x / count                                        # (1, C)
    var = jnp.maximum(sum_sq / count - mean * mean, 0.0)        # biased (BN train)
    inv_std = 1.0 / jnp.sqrt(var + jnp.float32(eps))
    scale = gain.astype(jnp.float32) * inv_std                  # (B, C)
    shift = bias.astype(jnp.float32) - mean * scale             # (B, C)

    return pl.pallas_call(
        _apply_kernel,
        out_shape=jax.ShapeDtypeStruct((B, C, HW), x3.dtype),
        grid_spec=pltpu.PrefetchScalarGridSpec(
            num_scalar_prefetch=0,
            grid=grid,
            in_specs=[pl.BlockSpec((bt, C, HW), lambda i: (i, 0, 0)),
                      pl.BlockSpec((bt, C, 1), lambda i: (i, 0, 0)),
                      pl.BlockSpec((bt, C, 1), lambda i: (i, 0, 0))],
            out_specs=pl.BlockSpec((bt, C, HW), lambda i: (i, 0, 0)),
        ),
        compiler_params=pltpu.CompilerParams(
            dimension_semantics=("parallel",),
            vmem_limit_bytes=_VMEM_LIMIT_BYTES),
    )(x3, scale.reshape(B, C, 1), shift.reshape(B, C, 1))


# ---------------------------------------------------------------------------
# Public wrapper / module
# ---------------------------------------------------------------------------

@functools.partial(jax.jit, static_argnames=("eps",))
def conditional_batchnorm2d(x, gain, bias, *, eps=1e-4):
    """Training-mode ConditionalBatchNorm2d forward.

    x:    (B, C, H, W) float
    gain: (B, C)  = 1 + embed0(y)
    bias: (B, C)  =     embed1(y)
    """
    B, C, H, W = x.shape
    HW = H * W
    x3 = x.reshape(B, C, HW)                       # lane-dense last dim

    ct = _channel_tile(B, C, HW, x.dtype.itemsize)
    if _fused_vmem_estimate(B, ct, HW, x.dtype.itemsize,
                            x.dtype.itemsize) <= _FUSED_VMEM_BUDGET:
        out3 = _fused_path(x3, gain, bias, ct, eps)      # single HBM read + write of x
    else:
        out3 = _two_pass_path(x3, gain, bias, eps)       # fallback for huge (B, HW)
    return out3.reshape(B, C, H, W)


class ConditionalBatchNorm2d:
    """JAX/Pallas port of models/model_utils.ConditionalBatchNorm2d (train-mode forward)."""

    def __init__(self, num_features, num_classes, spectral_norm=False, *,
                 eps=1e-4, momentum=0.1, key=None):
        self.num_features = num_features
        self.num_classes = num_classes
        self.eps = float(eps)
        self.momentum = float(momentum)
        self.spectral_norm = spectral_norm
        if key is None:
            key = jax.random.PRNGKey(0)
        k0, k1 = jax.random.split(key)
        # nn.Embedding default init: N(0, 1)
        self.embed0 = jax.random.normal(k0, (num_classes, num_features), jnp.float32)
        self.embed1 = jax.random.normal(k1, (num_classes, num_features), jnp.float32)
        # TODO(synk): spectral_norm weight reparametrization (stateful power iteration)
        # is not ported; plain embedding weights are used even when spectral_norm=True.
        # TODO(synk): running_mean/running_var momentum buffer updates are not tracked;
        # the forward output matches module.train() semantics (batch statistics).

    def __call__(self, x, y):
        B, C, H, W = x.shape
        assert C == self.num_features, "channel mismatch with num_features"
        gain = 1.0 + jnp.take(self.embed0, y, axis=0)    # (B, C)
        bias = jnp.take(self.embed1, y, axis=0)          # (B, C)
        return conditional_batchnorm2d(x, gain, bias, eps=self.eps)


if __name__ == "__main__":
    key = jax.random.PRNGKey(0)
    kx, ky, km = jax.random.split(key, 3)

    B, C, H, W = 2, 4, 16, 16
    num_classes = 10
    x = jax.random.normal(kx, (B, C, H, W), dtype=jnp.float32)
    y = jax.random.randint(ky, (B,), 0, num_classes)

    mod = ConditionalBatchNorm2d(C, num_classes, spectral_norm=False, key=km)
    out = jax.block_until_ready(mod(x, y))

    # Pure-JAX reference (PyTorch train-mode BN: biased variance, eps=1e-4)
    gain = 1.0 + mod.embed0[y]                    # (B, C)
    bias = mod.embed1[y]                          # (B, C)
    mean = x.mean(axis=(0, 2, 3))
    var = x.var(axis=(0, 2, 3))                   # biased (ddof=0)
    xn = (x - mean[None, :, None, None]) / jnp.sqrt(var + mod.eps)[None, :, None, None]
    ref = xn * gain[:, :, None, None] + bias[:, :, None, None]

    np.testing.assert_allclose(np.asarray(out), np.asarray(ref), rtol=2e-5, atol=2e-5)
    print("KERNEL_OK")
</pallas_src>

<mosaic_0001>
module attributes {stable_mosaic.version = 11 : i64} {
  func.func @_fused_cbn_kernel(%arg0: i32, %arg1: memref<2x4x256xf32, #tpu.memory_space<vmem>>, %arg2: memref<2x4x1xf32, #tpu.memory_space<vmem>>, %arg3: memref<2x4x1xf32, #tpu.memory_space<vmem>>, %arg4: memref<2x4x256xf32, #tpu.memory_space<vmem>>) attributes {dimension_semantics = [#tpu.dimension_semantics<parallel>], iteration_bounds = array<i64: 1>, scalar_prefetch = 0 : i64, scratch_operands = 0 : i64, tpu.core_type = #tpu.core_type<tc>, window_params = [{transform_indices = @transform_0, window_bounds = array<i64: 2, 4, 256>}, {transform_indices = @transform_1, window_bounds = array<i64: 2, 4, 1>}, {transform_indices = @transform_2, window_bounds = array<i64: 2, 4, 1>}, {transform_indices = @transform_3, window_bounds = array<i64: 2, 4, 256>}]} {
    %c0 = arith.constant 0 : index
    %c0_0 = arith.constant 0 : index
    %c0_1 = arith.constant 0 : index
    %0 = vector.load %arg1[%c0, %c0_0, %c0_1] : memref<2x4x256xf32, #tpu.memory_space<vmem>>, vector<2x4x256xf32>
    %cst = arith.constant dense<0.000000e+00> : vector<2x4xf32>
    %1 = vector.multi_reduction <add>, %0, %cst [2] : vector<2x4x256xf32> to vector<2x4xf32>
    %2 = vector.shape_cast %1 : vector<2x4xf32> to vector<2x4x1xf32>
    %cst_2 = arith.constant dense<0.000000e+00> : vector<4x1xf32>
    %3 = vector.multi_reduction <add>, %2, %cst_2 [0] : vector<2x4x1xf32> to vector<4x1xf32>
    %4 = vector.shape_cast %3 : vector<4x1xf32> to vector<1x4x1xf32>
    %cst_3 = arith.constant 0.001953125 : f32
    %5 = vector.broadcast %cst_3 : f32 to vector<1x4x1xf32>
    %6 = arith.mulf %4, %5 : vector<1x4x1xf32>
    %7 = vector.broadcast %6 : vector<1x4x1xf32> to vector<2x4x256xf32>
    %8 = arith.subf %0, %7 : vector<2x4x256xf32>
    %9 = arith.mulf %8, %8 : vector<2x4x256xf32>
    %cst_4 = arith.constant dense<0.000000e+00> : vector<2x4xf32>
    %10 = vector.multi_reduction <add>, %9, %cst_4 [2] : vector<2x4x256xf32> to vector<2x4xf32>
    %11 = vector.shape_cast %10 : vector<2x4xf32> to vector<2x4x1xf32>
    %cst_5 = arith.constant dense<0.000000e+00> : vector<4x1xf32>
    %12 = vector.multi_reduction <add>, %11, %cst_5 [0] : vector<2x4x1xf32> to vector<4x1xf32>
    %13 = vector.shape_cast %12 : vector<4x1xf32> to vector<1x4x1xf32>
    %cst_6 = arith.constant 0.001953125 : f32
    %14 = vector.broadcast %cst_6 : f32 to vector<1x4x1xf32>
    %15 = arith.mulf %13, %14 : vector<1x4x1xf32>
    %cst_7 = arith.constant 9.99999974E-5 : f32
    %16 = vector.broadcast %cst_7 : f32 to vector<1x4x1xf32>
    %17 = arith.addf %15, %16 : vector<1x4x1xf32>
    %18 = math.rsqrt %17 : vector<1x4x1xf32>
    %c0_8 = arith.constant 0 : index
    %c0_9 = arith.constant 0 : index
    %c0_10 = arith.constant 0 : index
    %19 = vector.load %arg2[%c0_8, %c0_9, %c0_10] : memref<2x4x1xf32, #tpu.memory_space<vmem>>, vector<2x4x1xf32>
    %20 = vector.broadcast %18 : vector<1x4x1xf32> to vector<2x4x1xf32>
    %21 = arith.mulf %19, %20 : vector<2x4x1xf32>
    %c0_11 = arith.constant 0 : index
    %c0_12 = arith.constant 0 : index
    %c0_13 = arith.constant 0 : index
    %22 = vector.load %arg3[%c0_11, %c0_12, %c0_13] : memref<2x4x1xf32, #tpu.memory_space<vmem>>, vector<2x4x1xf32>
    %23 = vector.broadcast %21 : vector<2x4x1xf32> to vector<2x4x256xf32>
    %24 = arith.mulf %8, %23 : vector<2x4x256xf32>
    %25 = vector.broadcast %22 : vector<2x4x1xf32> to vector<2x4x256xf32>
    %26 = arith.addf %24, %25 : vector<2x4x256xf32>
    %c0_14 = arith.constant 0 : index
    %c0_15 = arith.constant 0 : index
    %c0_16 = arith.constant 0 : index
    %27 = vector.load %arg4[%c0_14, %c0_15, %c0_16] : memref<2x4x256xf32, #tpu.memory_space<vmem>>, vector<2x4x256xf32>
    tpu.vector_store %arg4[%c0_14, %c0_15, %c0_16], %26 {strides = array<i32>} : memref<2x4x256xf32, #tpu.memory_space<vmem>>, vector<2x4x256xf32>,
    return
  }
  func.func @transform_0(%arg0: i32) -> (i32, i32, i32) {
    %c0_i32 = arith.constant 0 : i32
    %c0_i32_0 = arith.constant 0 : i32
    %c0_i32_1 = arith.constant 0 : i32
    return %c0_i32, %arg0, %c0_i32_0 : i32, i32, i32
  }
  func.func @transform_1(%arg0: i32) -> (i32, i32, i32) {
    %c0_i32 = arith.constant 0 : i32
    %c0_i32_0 = arith.constant 0 : i32
    %c0_i32_1 = arith.constant 0 : i32
    return %c0_i32, %arg0, %c0_i32_0 : i32, i32, i32
  }
  func.func @transform_2(%arg0: i32) -> (i32, i32, i32) {
    %c0_i32 = arith.constant 0 : i32
    %c0_i32_0 = arith.constant 0 : i32
    %c0_i32_1 = arith.constant 0 : i32
    return %c0_i32, %arg0, %c0_i32_0 : i32, i32, i32
  }
  func.func @transform_3(%arg0: i32) -> (i32, i32, i32) {
    %c0_i32 = arith.constant 0 : i32
    %c0_i32_0 = arith.constant 0 : i32
    %c0_i32_1 = arith.constant 0 : i32
    return %c0_i32, %arg0, %c0_i32_0 : i32, i32, i32
  }
}

</mosaic_0001>

<bundles_post_ra>
// kernel: conditional_batchnorm2d.1
= control target key start
LH: loop header
LB: loop body
LE: loop exit
PB: predicated region body
PF: predicated region fallthrough
CT: control target
= control target key end

     0   :  { %vm22_vm0 = vcmask 1043456   ;;  %v144_v10 = vmov 839922192   ;;  %v41_v12 = vlaneseq  ;;  %v145_v35 = vmov 0   ;;  %s202_s0 = inlined_call_operand.vmem [shape: f32[2,4,256], index: 0, kind: input, shape index: {}]   ;;  %s203_s2 = inlined_call_operand.vmem [shape: f32[2,4,1], index: 2, kind: input, shape index: {}]   ;;  %s204_s1 = inlined_call_operand.vmem [shape: f32[2,4,1], index: 1, kind: input, shape index: {}]   ;;  %s205_s3 = inlined_call_operand.vmem [shape: f32[2,4,256], index: 3, kind: output, shape index: {}]  }
   0x1   :  { %v14_v0 = vld [vmem:[%s202_s0] sm:$0xff]  ;;  %v15_v1 = vld [vmem:[%s202_s0 + $0x8] sm:$0xff]  ;;  %v39_v11 = vunpack.c.l.s4 %v144_v10  ;;  %139 = vset.pattern.permute.xlu1 %v145_v35  ;;  %138 = vset.pattern.permute.xlu0 %v145_v35 }
   0x2   :  { %v18_v2 = vcombine.high %v14_v0, %v14_v0  ;;  %v23_v3 = vsel %vm22_vm0, %v14_v0, 0.0  ;;  %v19_v4 = vcombine.high %v15_v1, %v15_v1  ;;  %v28_v6 = vsel %vm22_vm0, %v15_v1, 0.0  ;;  %v76_v36 = vld [vmem:[%s203_s2] sm:$0xf]  ;;  %v73_v44 = vld [vmem:[%s204_s1 + $0x4] sm:$0xf] }
   0x3   :  { %v40_v14 = vunpack.c.0.s8 %v39_v11  ;;  %v42_v15 = vshrl.u32 %v41_v12, 7  ;;  %v72_v45 = vld [vmem:[%s204_s1] sm:$0xf]  ;;  %v77_v49 = vld [vmem:[%s203_s2 + $0x4] sm:$0xf] }
   0x4   :  { %v24_v5 = vsel %vm22_vm0, %v18_v2, 0.0  ;;  %v29_v7 = vsel %vm22_vm0, %v19_v4, 0.0 }
   0x5   :  { %v25_v8 = vadd.f32 %v24_v5, %v23_v3  ;;  %v30_v9 = vadd.f32 %v29_v7, %v28_v6  ;;  %v43_v19 = vsub.s32 %v40_v14, %v42_v15 }
   0x7   :  { %26 = vadd.xlane.f32.xlu0 %v25_v8 }
   0xb   :  { %31 = vadd.xlane.f32.xlu0 %v30_v9 }
  0x94   :  { %v27_v13 = vpop.xlane.xlu0 %26 }
  0x95   :  { %v33_v17 = vsel %vm22_vm0, %v27_v13, 0.0 }
  0x98   :  { %v32_v16 = vpop.xlane.xlu0 %31 }
  0x99   :  { %v34_v18 = vsel %vm22_vm0, %v32_v16, 0.0 }
  0x9a   :  { %v35_v20 = vadd.f32 %v34_v18, %v33_v17 }
  0x9c   :  { %v36_v21 = vmul.f32 0.001953125, %v35_v20 }
  0x9e   :  { %v44_v22 = vrot.slane %v36_v21, %v43_v19 }
  0xa0   :  { %v47_v23 = vsub.f32 %v15_v1, %v44_v22  ;;  %v46_v24 = vsub.f32 %v14_v0, %v44_v22 }
  0xa2   :  { %v48_v25 = vmul.f32 %v46_v24, %v46_v24  ;;  %v49_v26 = vmul.f32 %v47_v23, %v47_v23 }
  0xa4   :  { %v52_v27 = vcombine.high %v48_v25, %v48_v25  ;;  %v53_v28 = vcombine.high %v49_v26, %v49_v26  ;;  %v56_v29 = vsel %vm22_vm0, %v48_v25, 0.0  ;;  %v61_v33 = vsel %vm22_vm0, %v49_v26, 0.0 }
  0xa6   :  { %v57_v30 = vsel %vm22_vm0, %v52_v27, 0.0  ;;  %v62_v32 = vsel %vm22_vm0, %v53_v28, 0.0 }
  0xa7   :  { %v58_v31 = vadd.f32 %v57_v30, %v56_v29  ;;  %v63_v34 = vadd.f32 %v62_v32, %v61_v33 }
  0xa9   :  { %59 = vadd.xlane.f32.xlu1 %v58_v31 }
  0xad   :  { %64 = vadd.xlane.f32.xlu1 %v63_v34 }
  0xbe   :  { %106 = vperm.xlu1 %139, %v76_v36  }
 0x136   :  { %v60_v37 = vpop.xlane.xlu1 %59 }
 0x137   :  { %v66_v39 = vsel %vm22_vm0, %v60_v37, 0.0 }
 0x13a   :  { %v65_v38 = vpop.xlane.xlu1 %64 }
 0x13b   :  { %v67_v40 = vsel %vm22_vm0, %v65_v38, 0.0 }
 0x13c   :  { %v68_v41 = vadd.f32 %v67_v40, %v66_v39 }
 0x13e   :  { %v69_v42 = vmul.f32 0.001953125, %v68_v41  ;;  %v107_v50 = vpop.permute.xlu1 %106 }
 0x13f   :  { %v118_v55 = vrot.slane %v107_v50, %v43_v19 }
 0x140   :  { %v70_v43 = vadd.f32 0.0001, %v69_v42 }
 0x142   :  { %142 = vrsqrt.f32 %v70_v43 }
 0x14c   :  { %v143_v46 = vpop.eup %142 }
 0x14d   :  { %v75_v47 = vmul.f32 %v143_v46, %v73_v44  ;;  %v74_v48 = vmul.f32 %v143_v46, %v72_v45 }
 0x14f   :  { %84 = vperm.xlu1 %139, %v75_v47   ;;  %80 = vperm.xlu0 %138, %v74_v48  }
 0x153   :  { %110 = vperm.xlu1 %139, %v77_v49  }
 0x1ce   :  { %v81_v51 = vpop.permute.xlu0 %80  ;;  %v85_v52 = vpop.permute.xlu1 %84 }
 0x1cf   :  { %v92_v53 = vrot.slane %v81_v51, %v43_v19  ;;  %v99_v54 = vrot.slane %v85_v52, %v43_v19 }
 0x1d1   :  { %v102_v56 = vmul.f32 %v92_v53, %v46_v24  ;;  %v103_v59 = vmul.f32 %v99_v54, %v47_v23 }
 0x1d2   :  { %v111_v57 = vpop.permute.xlu1 %110 }
 0x1d3   :  { %v128_v58 = vadd.f32 %v118_v55, %v102_v56  ;;  %v125_v60 = vrot.slane %v111_v57, %v43_v19 }
 0x1d5   :  { %130 = vst [vmem:[%s205_s3] sm:$0xff] %v128_v58  ;;  %v129_v61 = vadd.f32 %v125_v60, %v103_v59 }
 0x1d7   :  { %131 = vst [vmem:[%s205_s3 + $0x8] sm:$0xff] %v129_v61 }

</bundles_post_ra>
